<compile_context>
chip_gen: v7x
topology: tpu7x:2x2x1
jax: 0.10.0
libtpu: 0.0.40
codegen_flags: <defaults>
</compile_context>

<pallas_src>
import numpy as np
import jax
import jax.numpy as jnp
from jax import lax
from jax.experimental import pallas as pl
from jax.experimental.pallas import tpu as pltpu


def _round_up(v, m):
    return (v + m - 1) // m * m


def _vmem_budget_bytes():
    """Per-generation scoped-VMEM budget (v5e/v6e: 128 MiB phys, v7x: 64 MiB)."""
    try:
        phys = int(pltpu.get_tpu_info().vmem_capacity_bytes)
    except Exception:
        phys = 64 << 20                      # conservative fallback (v7x size)
    return int(max(min(phys * 0.6, 100 << 20), 16 << 20))


def _choose_tile_rows(n_rows, h_pad, vmem_budget):
    """Row-tile height: ~2 MiB of x per tile, VMEM- and padding-waste-capped."""
    target_bytes = 2 << 20
    tm = max((target_bytes // (4 * h_pad)) // 8 * 8, 8)
    # Pass-2 footprint ~= double-buffered (x in + out) tiles = 16*TM*H_pad B;
    # keep it at <= half the budget for headroom.
    cap = max(((vmem_budget // 2) // (16 * h_pad)) // 8 * 8, 8)
    tm = min(tm, cap)
    tm = min(tm, _round_up(max(n_rows, 1), 8))       # never exceed the data
    # Limit row-padding waste to ~12.5% of real rows (pure wasted HBM BW).
    while tm > 8 and (_round_up(n_rows, tm) - n_rows) * 8 > n_rows:
        tm = max((tm // 2) // 8 * 8, 8)
    return tm


# ---------------------------------------------------------------------------
# Pass 1: per-graph segment statistics (sum(x), sum(x*x)).
# Grid = (slab "parallel", tile "arbitrary"); each slab owns its own
# [1, B_pad, H_pad] accumulator pair, resident across its tile axis.
# ---------------------------------------------------------------------------
def _seg_stats_kernel(gid_ref, x_ref, sum_ref, sumsq_ref):
    # gid_ref: [1, 1, TM] int32 (graph id per row, -1 for padding rows)
    # x_ref:   [TM, H_pad]
    # sum_ref, sumsq_ref: [1, B_pad, H_pad] f32 accumulators
    @pl.when(pl.program_id(1) == 0)
    def _():
        sum_ref[...] = jnp.zeros_like(sum_ref)
        sumsq_ref[...] = jnp.zeros_like(sumsq_ref)

    b_pad = sum_ref.shape[1]
    tm = x_ref.shape[0]
    gid = gid_ref[0]                                        # [1, TM] int32
    onehot = (lax.broadcasted_iota(jnp.int32, (b_pad, tm), 0) == gid
              ).astype(jnp.float32)                         # [B_pad, TM]
    x = x_ref[...].astype(jnp.float32)
    sum_ref[0] += jnp.dot(onehot, x, preferred_element_type=jnp.float32,
                          precision=lax.Precision.HIGHEST)
    sumsq_ref[0] += jnp.dot(onehot, x * x, preferred_element_type=jnp.float32,
                            precision=lax.Precision.HIGHEST)


# ---------------------------------------------------------------------------
# Pass 2: elementwise normalize.  tile_gid (scalar-prefetched, SMEM) gives the
# graph id when the whole tile is inside one graph (-1 for boundary tiles):
# fast path broadcasts one row of the scale/shift tables; boundary tiles use
# the small one-hot @ table matmuls.
# ---------------------------------------------------------------------------
def _apply_kernel(tile_gid_ref, gid_ref, x_ref, scale_ref, shift_ref, out_ref):
    g = tile_gid_ref[pl.program_id(0)]
    x = x_ref[...].astype(jnp.float32)

    @pl.when(g >= 0)
    def _():
        out_ref[...] = (x * scale_ref[pl.ds(g, 1), :]
                        + shift_ref[pl.ds(g, 1), :]).astype(out_ref.dtype)

    @pl.when(g < 0)
    def _():
        b_pad = scale_ref.shape[0]
        tm = x_ref.shape[0]
        onehot = (gid_ref[...] == lax.broadcasted_iota(
            jnp.int32, (tm, b_pad), 1)).astype(jnp.float32)  # [TM, B_pad]
        row_scale = jnp.dot(onehot, scale_ref[...],
                            preferred_element_type=jnp.float32,
                            precision=lax.Precision.HIGHEST)
        row_shift = jnp.dot(onehot, shift_ref[...],
                            preferred_element_type=jnp.float32,
                            precision=lax.Precision.HIGHEST)
        out_ref[...] = (x * row_scale + row_shift).astype(out_ref.dtype)


def graph_norm_pallas(x, batch_num_nodes, weight, bias, mean_scale,
                      *, eps=1e-6, keep_padded_output=False):
    """GraphNorm over ragged node segments.  x: [N, H]."""
    N, H = x.shape
    lens_list = [int(v) for v in batch_num_nodes]
    B = len(lens_list)
    assert sum(lens_list) == N, "batch_num_nodes must sum to x.shape[0]"

    vmem_budget = _vmem_budget_bytes()
    H_pad = _round_up(H, 128)
    B_pad = _round_up(max(B, 1), 8)
    TM = _choose_tile_rows(N, H_pad, vmem_budget)

    n_tiles_raw = max(-(-N // TM), 1)
    n_slabs = 2 if (n_tiles_raw >= 4 or (n_tiles_raw >= 2 and n_tiles_raw % 2 == 0)) else 1
    tiles_per_slab = -(-n_tiles_raw // n_slabs)
    n_tiles = n_slabs * tiles_per_slab
    N_pad = n_tiles * TM

    # --- Trace-time row -> graph ids (tiny int32 arrays, not O(B*N) f32). ---
    gid = np.full((N_pad,), -1, np.int32)
    off = 0
    for g, n in enumerate(lens_list):
        gid[off:off + n] = g
        off += n
    gid_row = gid.reshape(n_tiles, 1, TM)          # pass 1: block (1, 1, TM)
    gid_col = gid.reshape(N_pad, 1)                # pass 2: block (TM, 1)
    tile_gid = np.full((n_tiles,), -1, np.int32)   # pass 2 fast-path selector
    for t in range(n_tiles):
        seg = gid[t * TM:(t + 1) * TM]
        real = seg[seg >= 0]
        if real.size and real.min() == real.max():
            tile_gid[t] = int(real[0])

    lens_np = np.zeros((B_pad,), np.float32)
    lens_np[:B] = np.asarray(lens_list, np.float32)
    # Empty segments (n == 0): inv_len 0 -> finite stats; never used.
    inv_len = np.where(lens_np > 0, 1.0 / np.maximum(lens_np, 1.0), 0.0)
    inv_len = jnp.asarray(inv_len, jnp.float32)[:, None]       # [B_pad, 1]

    # Pad only when needed (no-op when shapes already tile/lane aligned).
    if (N_pad, H_pad) != (N, H):
        # TODO(synk): callers stacking many layers should keep activations in
        # the padded layout (keep_padded_output=True) to skip this HBM pass.
        x_p = jnp.zeros((N_pad, H_pad), x.dtype).at[:N, :H].set(x)
    else:
        x_p = x

    def _pad_param(p):
        p = jnp.asarray(p, jnp.float32).reshape(H)
        if H_pad != H:
            p = jnp.zeros((H_pad,), jnp.float32).at[:H].set(p)
        return p

    w = _pad_param(weight)
    b = _pad_param(bias)
    ms = _pad_param(mean_scale)

    cp_stats = pltpu.CompilerParams(
        dimension_semantics=("parallel", "arbitrary"),
        vmem_limit_bytes=vmem_budget)
    cp_apply = pltpu.CompilerParams(
        dimension_semantics=("parallel",),
        vmem_limit_bytes=vmem_budget)

    # ---- Pass 1: per-graph sum / sum-of-squares (single pass over x). ----
    slab_sum, slab_sq = pl.pallas_call(
        _seg_stats_kernel,
        out_shape=(jax.ShapeDtypeStruct((n_slabs, B_pad, H_pad), jnp.float32),
                   jax.ShapeDtypeStruct((n_slabs, B_pad, H_pad), jnp.float32)),
        grid_spec=pltpu.PrefetchScalarGridSpec(
            num_scalar_prefetch=0,
            grid=(n_slabs, tiles_per_slab),
            in_specs=[
                pl.BlockSpec((1, 1, TM),
                             lambda c, t: (c * tiles_per_slab + t, 0, 0)),
                pl.BlockSpec((TM, H_pad),
                             lambda c, t: (c * tiles_per_slab + t, 0)),
            ],
            out_specs=[
                pl.BlockSpec((1, B_pad, H_pad), lambda c, t: (c, 0, 0)),
                pl.BlockSpec((1, B_pad, H_pad), lambda c, t: (c, 0, 0)),
            ]),
        compiler_params=cp_stats,
    )(jnp.asarray(gid_row), x_p)

    # ---- Tiny per-graph epilogue in plain JAX ([B_pad, H_pad]). ----
    ssum = jnp.sum(slab_sum, axis=0)
    ssq = jnp.sum(slab_sq, axis=0)
    mean = ssum * inv_len
    ex2 = ssq * inv_len
    mshift = mean * ms[None, :]
    # var = E[(x - mean*ms)^2] = E[x^2] - 2*mshift*E[x] + mshift^2
    var = ex2 - 2.0 * mshift * mean + mshift * mshift
    var = jnp.maximum(var, 0.0)
    inv_std = lax.rsqrt(var + eps)
    scale = w[None, :] * inv_std                     # weight folded into scale
    shift = b[None, :] - mshift * scale

    # ---- Pass 2: normalize each disjoint row tile. ----
    out_p = pl.pallas_call(
        _apply_kernel,
        out_shape=jax.ShapeDtypeStruct((N_pad, H_pad), x.dtype),
        grid_spec=pltpu.PrefetchScalarGridSpec(
            num_scalar_prefetch=1,                   # tile_gid -> SMEM
            grid=(n_tiles,),
            in_specs=[
                pl.BlockSpec((TM, 1), lambda t, tg: (t, 0)),
                pl.BlockSpec((TM, H_pad), lambda t, tg: (t, 0)),
                pl.BlockSpec((B_pad, H_pad), lambda t, tg: (0, 0)),
                pl.BlockSpec((B_pad, H_pad), lambda t, tg: (0, 0)),
            ],
            out_specs=pl.BlockSpec((TM, H_pad), lambda t, tg: (t, 0))),
        compiler_params=cp_apply,
    )(jnp.asarray(tile_gid), jnp.asarray(gid_col), x_p, scale, shift)

    if keep_padded_output:
        return out_p                                 # [N_pad, H_pad]
    if (N_pad, H_pad) != (N, H):
        out_p = out_p[:N, :H]
    return out_p


class NormLayerPallas:
    """Mirror of the PyTorch NormLayer for norm_type='graphnorm'."""

    def __init__(self, hidden_dim, norm_type="graphnorm"):
        if norm_type != "graphnorm":
            raise NotImplementedError(
                "Only the graphnorm branch is implemented as a Pallas kernel."
            )
        # Deterministic init, identical to the PyTorch module's __init__.
        self.weight = jnp.ones((hidden_dim,), jnp.float32)
        self.bias = jnp.zeros((hidden_dim,), jnp.float32)
        self.mean_scale = jnp.ones((hidden_dim,), jnp.float32)

    def __call__(self, batch_num_nodes, x):
        return graph_norm_pallas(
            x, batch_num_nodes, self.weight, self.bias, self.mean_scale
        )


def _graph_norm_reference(x, batch_num_nodes, weight, bias, mean_scale):
    """Pure-numpy replica of the PyTorch graphnorm forward."""
    x = np.asarray(x, np.float32)
    out = np.zeros_like(x)
    off = 0
    for n in batch_num_nodes:
        if n == 0:
            continue
        seg = x[off:off + n]
        mean = seg.mean(axis=0, keepdims=True)
        sub = seg - mean * mean_scale
        std = np.sqrt((sub ** 2).mean(axis=0, keepdims=True) + 1e-6)
        out[off:off + n] = weight * sub / std + bias
        off += n
    return out


if __name__ == "__main__":
    # Case 1: small shapes matching the module's intended use.
    hidden_dim = 32
    batch_num_nodes = [3, 5]          # 2 graphs, 8 total nodes (ragged)
    N = sum(batch_num_nodes)
    key = jax.random.PRNGKey(0)
    x = jax.random.normal(key, (N, hidden_dim), dtype=jnp.float32)

    layer = NormLayerPallas(hidden_dim, "graphnorm")
    out = jax.block_until_ready(layer(batch_num_nodes, x))
    ref = _graph_norm_reference(
        np.asarray(x), batch_num_nodes,
        np.asarray(layer.weight), np.asarray(layer.bias),
        np.asarray(layer.mean_scale))
    np.testing.assert_allclose(np.asarray(out), ref, rtol=1e-4, atol=1e-4)

    # Case 2: empty segment, non-trivial affine parameters (boundary path).
    batch_num_nodes2 = [700, 0, 341, 83]
    N2 = sum(batch_num_nodes2)
    k1, k2, k3, k4 = jax.random.split(jax.random.PRNGKey(1), 4)
    x2 = jax.random.normal(k1, (N2, hidden_dim), dtype=jnp.float32)
    layer.weight = jax.random.normal(k2, (hidden_dim,), jnp.float32)
    layer.bias = jax.random.normal(k3, (hidden_dim,), jnp.float32)
    layer.mean_scale = jax.random.normal(k4, (hidden_dim,), jnp.float32)
    out2 = jax.block_until_ready(layer(batch_num_nodes2, x2))
    ref2 = _graph_norm_reference(
        np.asarray(x2), batch_num_nodes2,
        np.asarray(layer.weight), np.asarray(layer.bias),
        np.asarray(layer.mean_scale))
    np.testing.assert_allclose(np.asarray(out2), ref2, rtol=1e-4, atol=1e-4)

    # Case 3: multi-tile path -> exercises the 2-slab stats accumulation,
    # the single-graph broadcast fast path, boundary tiles and padding tiles.
    hidden3 = 256
    batch_num_nodes3 = [5000, 3240]
    N3 = sum(batch_num_nodes3)
    k5, k6, k7, k8 = jax.random.split(jax.random.PRNGKey(2), 4)
    x3 = jax.random.normal(k5, (N3, hidden3), dtype=jnp.float32)
    layer3 = NormLayerPallas(hidden3, "graphnorm")
    layer3.weight = jax.random.normal(k6, (hidden3,), jnp.float32)
    layer3.bias = jax.random.normal(k7, (hidden3,), jnp.float32)
    layer3.mean_scale = jax.random.normal(k8, (hidden3,), jnp.float32)
    out3 = jax.block_until_ready(layer3(batch_num_nodes3, x3))
    ref3 = _graph_norm_reference(
        np.asarray(x3), batch_num_nodes3,
        np.asarray(layer3.weight), np.asarray(layer3.bias),
        np.asarray(layer3.mean_scale))
    np.testing.assert_allclose(np.asarray(out3), ref3, rtol=2e-4, atol=2e-4)

    print("KERNEL_OK")
</pallas_src>

<mosaic_0001>
module attributes {stable_mosaic.version = 11 : i64} {
  func.func @_seg_stats_kernel(%arg0: i32, %arg1: i32, %arg2: memref<1x1x8xi32, #tpu.memory_space<vmem>>, %arg3: memref<8x128xf32, #tpu.memory_space<vmem>>, %arg4: memref<1x8x128xf32, #tpu.memory_space<vmem>>, %arg5: memref<1x8x128xf32, #tpu.memory_space<vmem>>) attributes {dimension_semantics = [#tpu.dimension_semantics<parallel>, #tpu.dimension_semantics<arbitrary>], iteration_bounds = array<i64: 1, 1>, scalar_prefetch = 0 : i64, scratch_operands = 0 : i64, tpu.core_type = #tpu.core_type<tc>, window_params = [{transform_indices = @transform_0, window_bounds = array<i64: 1, 1, 8>}, {transform_indices = @transform_1, window_bounds = array<i64: 8, 128>}, {transform_indices = @transform_2, window_bounds = array<i64: 1, 8, 128>}, {transform_indices = @transform_3, window_bounds = array<i64: 1, 8, 128>}]} {
    %c0_i32 = arith.constant 0 : i32
    %0 = arith.cmpi eq, %arg1, %c0_i32 : i32
    %1 = arith.extui %0 : i1 to i32
    %c0_i32_0 = arith.constant 0 : i32
    %2 = arith.cmpi ne, %1, %c0_i32_0 : i32
    scf.if %2 {
      %cst_18 = arith.constant 0.000000e+00 : f32
      %26 = vector.broadcast %cst_18 : f32 to vector<1x8x128xf32>
      %c0_19 = arith.constant 0 : index
      %c0_20 = arith.constant 0 : index
      %c0_21 = arith.constant 0 : index
      %27 = vector.load %arg4[%c0_19, %c0_20, %c0_21] : memref<1x8x128xf32, #tpu.memory_space<vmem>>, vector<1x8x128xf32>
      tpu.vector_store %arg4[%c0_19, %c0_20, %c0_21], %26 {strides = array<i32>} : memref<1x8x128xf32, #tpu.memory_space<vmem>>, vector<1x8x128xf32>,
      %cst_22 = arith.constant 0.000000e+00 : f32
      %28 = vector.broadcast %cst_22 : f32 to vector<1x8x128xf32>
      %c0_23 = arith.constant 0 : index
      %c0_24 = arith.constant 0 : index
      %c0_25 = arith.constant 0 : index
      %29 = vector.load %arg5[%c0_23, %c0_24, %c0_25] : memref<1x8x128xf32, #tpu.memory_space<vmem>>, vector<1x8x128xf32>
      tpu.vector_store %arg5[%c0_23, %c0_24, %c0_25], %28 {strides = array<i32>} : memref<1x8x128xf32, #tpu.memory_space<vmem>>, vector<1x8x128xf32>,
    } else {
    }
    %c0 = arith.constant 0 : index
    %c0_1 = arith.constant 0 : index
    %c0_2 = arith.constant 0 : index
    %3 = vector.load %arg2[%c0, %c0_1, %c0_2] : memref<1x1x8xi32, #tpu.memory_space<vmem>>, vector<1x1x8xi32>
    %4 = vector.shape_cast %3 : vector<1x1x8xi32> to vector<1x8xi32>
    %5 = tpu.iota {dimensions = array<i32: 0>} : vector<8x8xi32>
    %6 = vector.broadcast %4 : vector<1x8xi32> to vector<8x8xi32>
    %7 = arith.cmpi eq, %5, %6 : vector<8x8xi32>
    %8 = arith.extui %7 : vector<8x8xi1> to vector<8x8xi32>
    %9 = arith.sitofp %8 : vector<8x8xi32> to vector<8x8xf32>
    %c0_3 = arith.constant 0 : index
    %c0_4 = arith.constant 0 : index
    %10 = vector.load %arg3[%c0_3, %c0_4] : memref<8x128xf32, #tpu.memory_space<vmem>>, vector<8x128xf32>
    %c0_5 = arith.constant 0 : index
    %c0_6 = arith.constant 0 : index
    %c0_7 = arith.constant 0 : index
    %11 = vector.load %arg4[%c0_5, %c0_6, %c0_7] : memref<1x8x128xf32, #tpu.memory_space<vmem>>, vector<1x8x128xf32>
    %12 = vector.shape_cast %11 : vector<1x8x128xf32> to vector<8x128xf32>
    %cst = arith.constant dense<0.000000e+00> : vector<8x128xf32>
    %13 = tpu.matmul %9, %10, %cst {dimension_numbers = #tpu.dot_dimension_numbers<[1], [0], [0], [1], [0, 0, 1, 1], [], []>, precision = #tpu.contract_precision<fp32>} : vector<8x8xf32>, vector<8x128xf32>, vector<8x128xf32> -> vector<8x128xf32>
    %14 = arith.addf %12, %13 : vector<8x128xf32>
    %c0_8 = arith.constant 0 : index
    %c0_9 = arith.constant 0 : index
    %c0_10 = arith.constant 0 : index
    %15 = vector.load %arg4[%c0_8, %c0_9, %c0_10] : memref<1x8x128xf32, #tpu.memory_space<vmem>>, vector<1x8x128xf32>
    %16 = vector.shape_cast %15 : vector<1x8x128xf32> to vector<8x128xf32>
    %17 = vector.shape_cast %14 : vector<8x128xf32> to vector<1x8x128xf32>
    tpu.vector_store %arg4[%c0_8, %c0_9, %c0_10], %17 {strides = array<i32>} : memref<1x8x128xf32, #tpu.memory_space<vmem>>, vector<1x8x128xf32>,
    %c0_11 = arith.constant 0 : index
    %c0_12 = arith.constant 0 : index
    %c0_13 = arith.constant 0 : index
    %18 = vector.load %arg5[%c0_11, %c0_12, %c0_13] : memref<1x8x128xf32, #tpu.memory_space<vmem>>, vector<1x8x128xf32>
    %19 = vector.shape_cast %18 : vector<1x8x128xf32> to vector<8x128xf32>
    %20 = arith.mulf %10, %10 : vector<8x128xf32>
    %cst_14 = arith.constant dense<0.000000e+00> : vector<8x128xf32>
    %21 = tpu.matmul %9, %20, %cst_14 {dimension_numbers = #tpu.dot_dimension_numbers<[1], [0], [0], [1], [0, 0, 1, 1], [], []>, precision = #tpu.contract_precision<fp32>} : vector<8x8xf32>, vector<8x128xf32>, vector<8x128xf32> -> vector<8x128xf32>
    %22 = arith.addf %19, %21 : vector<8x128xf32>
    %c0_15 = arith.constant 0 : index
    %c0_16 = arith.constant 0 : index
    %c0_17 = arith.constant 0 : index
    %23 = vector.load %arg5[%c0_15, %c0_16, %c0_17] : memref<1x8x128xf32, #tpu.memory_space<vmem>>, vector<1x8x128xf32>
    %24 = vector.shape_cast %23 : vector<1x8x128xf32> to vector<8x128xf32>
    %25 = vector.shape_cast %22 : vector<8x128xf32> to vector<1x8x128xf32>
    tpu.vector_store %arg5[%c0_15, %c0_16, %c0_17], %25 {strides = array<i32>} : memref<1x8x128xf32, #tpu.memory_space<vmem>>, vector<1x8x128xf32>,
    return
  }
  func.func @transform_0(%arg0: i32, %arg1: i32) -> (i32, i32, i32) {
    %c1_i32 = arith.constant 1 : i32
    %0 = arith.muli %arg0, %c1_i32 : i32
    %1 = arith.addi %0, %arg1 : i32
    %c0_i32 = arith.constant 0 : i32
    %c0_i32_0 = arith.constant 0 : i32
    %c0_i32_1 = arith.constant 0 : i32
    return %1, %c0_i32, %c0_i32_0 : i32, i32, i32
  }
  func.func @transform_1(%arg0: i32, %arg1: i32) -> (i32, i32) {
    %c1_i32 = arith.constant 1 : i32
    %0 = arith.muli %arg0, %c1_i32 : i32
    %1 = arith.addi %0, %arg1 : i32
    %c0_i32 = arith.constant 0 : i32
    %c0_i32_0 = arith.constant 0 : i32
    return %1, %c0_i32 : i32, i32
  }
  func.func @transform_2(%arg0: i32, %arg1: i32) -> (i32, i32, i32) {
    %c0_i32 = arith.constant 0 : i32
    %c0_i32_0 = arith.constant 0 : i32
    %c0_i32_1 = arith.constant 0 : i32
    return %arg0, %c0_i32, %c0_i32_0 : i32, i32, i32
  }
  func.func @transform_3(%arg0: i32, %arg1: i32) -> (i32, i32, i32) {
    %c0_i32 = arith.constant 0 : i32
    %c0_i32_0 = arith.constant 0 : i32
    %c0_i32_1 = arith.constant 0 : i32
    return %arg0, %c0_i32, %c0_i32_0 : i32, i32, i32
  }
}

</mosaic_0001>

<bundles_post_ra>
// kernel: tpu_custom_call.1
= control target key start
LH: loop header
LB: loop body
LE: loop exit
PB: predicated region body
PF: predicated region fallthrough
CT: control target
= control target key end

     0   :  { %9 = vsyncpa [#allocation3], 0  ;;  %s1309_s0 = inlined_call_operand.hbm [shape: s32[1,1,8], index: 0, kind: input, shape index: {}]   ;;  %s1310_s1 = inlined_call_operand.hbm [shape: f32[8,128], index: 1, kind: input, shape index: {}]   ;;  %s1311_s2 = inlined_call_operand.hbm [shape: f32[1,8,128], index: 2, kind: output, shape index: {0}]   ;;  %s1312_s3 = inlined_call_operand.hbm [shape: f32[1,8,128], index: 3, kind: output, shape index: {1}]  }
   0x1   :  { %10 = vsyncpa [#allocation6], 0 }
   0x2   :  { %11 = vsyncpa [#allocation4], 0 }
   0x3   :  { %12 = vsyncpa [#allocation9], 0  ;;  %s1191_s12 = smov [#allocation2]   ;;  %s1192_s14 = smov [#allocation5]  }
   0x4   :  { %s22_s13 = sshll.u32 %s1191_s12, 4  ;;  %s35_s15 = sshll.u32 %s1192_s14, 4  ;;  %s23_s13 = int_to_ptr.vmem [resolvable:$true] %s22_s13  ;;  %s36_s15 = int_to_ptr.vmem [resolvable:$true] %s35_s15 }
   0x5   :  { %s1095_s18 = scalar_lea.hbm %s1309_s0, 16 }
   0x6   :  { %p1096_p0 = scmp.ne.s32.totalorder %s1309_s0, %s1095_s18  ;;  %p1099_p1 = scmp.lt.u32.totalorder %s1095_s18, %s1309_s0 }
   0x8   :  { %p1101_p2 = pnand %p1099_p1, %p1096_p0 }
   0xa   :  { %1104 = shalt.err (!%p1101_p2)
}
   0xb   :  { %s1105_s23 = scalar_lea.vmem %s23_s13, 16  ;;  %s1109_s24 = scalar_lea.vmem %s23_s13, 32 }
   0xc   :  { %p1106_p3 = scmp.ne.s32.totalorder %s23_s13, %s1105_s23  ;;  %p1110_p4 = scmp.lt.s32.totalorder %s23_s13, %s23_s13 }
   0xd   :  { %p1111_p5 = scmp.lt.s32.totalorder %s1109_s24, %s1105_s23 }
   0xf   :  { %p1112_p6 = por %p1111_p5, %p1110_p4 }
  0x11   :  { %p1113_p7 = pnand %p1112_p6, %p1106_p3 }
  0x13   :  { %1116 = shalt.err (!%p1113_p7)
}
  0x14   :  { %25 = dma.hbm_to_vmem [thread:$0]  %s1309_s0, 16, %s23_s13, [#allocation3]  }
  0x15   :  { %s1117_s29 = scalar_lea.hbm %s1310_s1, 128 }
  0x16   :  { %p1118_p8 = scmp.ne.s32.totalorder %s1310_s1, %s1117_s29  ;;  %p1121_p9 = scmp.lt.u32.totalorder %s1117_s29, %s1310_s1 }
  0x18   :  { %p1123_p10 = pnand %p1121_p9, %p1118_p8 }
  0x1a   :  { %1126 = shalt.err (!%p1123_p10)
}
  0x1b   :  { %s1127_s7 = scalar_lea.vmem %s36_s15, 128  ;;  %p1132_p12 = scmp.lt.s32.totalorder %s36_s15, %s36_s15 }
  0x1c   :  { %p1128_p11 = scmp.ne.s32.totalorder %s36_s15, %s1127_s7  ;;  %p1133_p13 = scmp.lt.s32.totalorder %s1127_s7, %s1127_s7 }
  0x1e   :  { %p1134_p0 = por %p1133_p13, %p1132_p12 }
  0x20   :  { %p1135_p1 = pnand %p1134_p0, %p1128_p11 }
  0x22   :  { %1138 = shalt.err (!%p1135_p1)
}
  0x23   :  { %38 = dma.hbm_to_vmem [thread:$0]  %s1310_s1, 128, %s36_s15, [#allocation6]  }
  0x24   :  { %1183 = dma.done.wait [#allocation3], 16  }
  0x25   :  { %1184 = vsyncadd [#allocation3], 4294967280 }
  0x26   :  { %1185 = dma.done.wait [#allocation6], 128  }
  0x27   :  { %1186 = vsyncadd [#allocation6], 4294967168  ;;  %v54_v0 = vlaneseq  ;;  %v1193_v1 = vmov 0.0   ;;  %vm1194_vm0 = vmmov 0   ;;  %v63_v3 = vld [vmem:[#allocation5] sm:$0xff]  ;;  %vm65_vm1 = vcmask 64512  }
  0x28   :  { %1029 = vmatprep.subr.mxu0 %v1193_v1  ;;  %1034 = vmatprep.subr.mxu1 %v1193_v1  ;;  %v997_v4 = vld [vmem:[#allocation2] ss:$0 sm:$0xff]  ;;  %v70_v5 = vand.u32 4294901760, %v63_v3  ;;  %v518_v6 = vmul.f32 %v63_v3, %v63_v3  ;;  %s1195_s1 = smov [#allocation7]  }
  0x29   :  { %1031 = vmatprep.mubr.msk.f32.mxu0 %vm1194_vm0, %v1193_v1  ;;  %1036 = vmatprep.mubr.msk.f32.mxu1 %vm1194_vm0, %v1193_v1  ;;  %v55_v2 = vshrl.u32 %v54_v0, 7  ;;  %s973_s9 = sshll.u32 %s1195_s1, 4  ;;  %s974_s9 = int_to_ptr.vmem [resolvable:$true] %s973_s9 }
  0x2a   :  { %1030 = vmatpush3.msra.mxu0 %v70_v5  ;;  %v147_v8 = vsub.f32 %v63_v3, %v70_v5  ;;  %v520_v10 = vand.u32 4294901760, %v518_v6  ;;  %s1139_s10 = scalar_lea.vmem %s974_s9, 128  ;;  %p1144_p3 = scmp.lt.s32.totalorder %s974_s9, %s974_s9 }
  0x2b   :  { %vm60_vm2 = vcmp.eq.s32.totalorder %v55_v2, %v997_v4  ;;  %1039 = vmatprep.subr.mxu0 %v1193_v1  ;;  %p1140_p2 = scmp.ne.s32.totalorder %s974_s9, %s1139_s10  ;;  %p1145_p4 = scmp.lt.s32.totalorder %s1139_s10, %s1139_s10 }
  0x2c   :  { %v998_v7 = vsel %vm60_vm2, 1.0, %v1193_v1  ;;  %v148_v12 = vand.u32 4294901760, %v147_v8  ;;  %v597_v14 = vsub.f32 %v518_v6, %v520_v10 }
  0x2d   :  { %v67_v9 = vsel %vm65_vm1, %v998_v7, 0  ;;  %p1146_p5 = por %p1145_p4, %p1144_p3 }
  0x2e   :  { %v136_v11 = vsub.f32 %v67_v9, %v67_v9  ;;  %v149_v15 = vsub.f32 %v147_v8, %v148_v12  ;;  %v598_v19 = vand.u32 4294901760, %v597_v14 }
  0x2f   :  { %p1147_p6 = pnand %p1146_p5, %p1140_p2 }
  0x30   :  { %v137_v13 = vand.u32 4294901760, %v136_v11  ;;  %v150_v17 = vand.u32 4294901760, %v149_v15  ;;  %v599_v20 = vsub.f32 %v597_v14, %v598_v19 }
  0x32   :  { %v138_v16 = vsub.f32 %v136_v11, %v137_v13  ;;  %1035 = vmatpush3.msra.mxu1 %v150_v17  ;;  %v600_v21 = vand.u32 4294901760, %v599_v20 }
  0x33   :  { %1037 = vmatmul.mubr.msk.f32.vlgmr.msra.gmra.mrb[0].mxu1 %vm65_vm1, %v998_v7  ;;  %1044 = vmatprep.subr.mxu1 %v1193_v1 }
  0x34   :  { %v139_v18 = vand.u32 4294901760, %v138_v16  ;;  %1045 = vmatpush3.msra.mxu1 %v70_v5  ;;  %1046 = vmatprep.mubr.msk.f32.mxu1 %vm1194_vm0, %v1193_v1 }
  0x35   :  { %1054 = vmatprep.subr.mxu1 %v1193_v1 }
  0x36   :  { %1032 = vmatmul.mubr.f32.vlgmr.msra.gmra.mrb[0].mxu0 %v139_v18 }
  0x37   :  { %1040 = vmatpush3.msra.mxu0 %v147_v8  ;;  %1041 = vmatprep.mubr.msk.f32.mxu0 %vm1194_vm0, %v1193_v1 }
  0x38   :  { %1049 = vmatprep.subr.mxu0 %v1193_v1  ;;  %1047 = vmatmul.mubr.f32.vlgmr.msra.gmra.mrb[2].mxu1 %v137_v13 }
  0x39   :  { %1055 = vmatpush3.msra.mxu1 %v70_v5  ;;  %1056 = vmatprep.mubr.msk.f32.mxu1 %vm1194_vm0, %v1193_v1 }
  0x3a   :  { %1042 = vmatmul.mubr.f32.vlgmr.msra.gmra.mrb[2].mxu0 %v136_v11  ;;  %1064 = vmatprep.subr.mxu1 %v1193_v1 }
  0x3b   :  { %1050 = vmatpush3.msra.mxu0 %v148_v12  ;;  %1051 = vmatprep.mubr.msk.f32.mxu0 %vm1194_vm0, %v1193_v1 }
  0x3c   :  { %1059 = vmatprep.subr.mxu0 %v1193_v1  ;;  %1057 = vmatmul.mubr.msk.f32.vlgmr.msra.gmra.mrb[4].mxu1 %vm65_vm1, %v998_v7 }
  0x3d   :  { %1065 = vmatpush3.msra.mxu1 %v600_v21  ;;  %1066 = vmatprep.mubr.msk.f32.mxu1 %vm1194_vm0, %v1193_v1 }
  0x3e   :  { %1052 = vmatmul.mubr.msk.f32.vlgmr.msra.gmra.mrb[4].mxu0 %vm65_vm1, %v998_v7  ;;  %1074 = vmatprep.subr.mxu1 %v1193_v1 }
  0x3f   :  { %1060 = vmatpush3.msra.mxu0 %v520_v10  ;;  %1061 = vmatprep.mubr.msk.f32.mxu0 %vm1194_vm0, %v1193_v1 }
  0x40   :  { %1069 = vmatprep.subr.mxu0 %v1193_v1  ;;  %1067 = vmatmul.mubr.msk.f32.vlgmr.msra.gmra.mrb[6].mxu1 %vm65_vm1, %v998_v7 }
  0x41   :  { %1075 = vmatpush3.msra.mxu1 %v520_v10  ;;  %1076 = vmatprep.mubr.msk.f32.mxu1 %vm1194_vm0, %v1193_v1 }
  0x42   :  { %1062 = vmatmul.mubr.f32.vlgmr.msra.gmra.mrb[6].mxu0 %v139_v18  ;;  %1084 = vmatprep.subr.mxu1 %v1193_v1 }
  0x43   :  { %1070 = vmatpush3.msra.mxu0 %v597_v14  ;;  %1071 = vmatprep.mubr.msk.f32.mxu0 %vm1194_vm0, %v1193_v1 }
  0x44   :  { %1079 = vmatprep.subr.mxu0 %v1193_v1  ;;  %1077 = vmatmul.mubr.f32.vlgmr.msra.gmra.mrb[8].mxu1 %v137_v13 }
  0x45   :  { %1085 = vmatpush3.msra.mxu1 %v520_v10  ;;  %1086 = vmatprep.mubr.msk.f32.mxu1 %vm1194_vm0, %v1193_v1 }
  0x46   :  { %1072 = vmatmul.mubr.f32.vlgmr.msra.gmra.mrb[8].mxu0 %v136_v11 }
  0x47   :  { %1080 = vmatpush3.msra.mxu0 %v598_v19  ;;  %1081 = vmatprep.mubr.msk.f32.mxu0 %vm1194_vm0, %v1193_v1 }
  0x48   :  { %1087 = vmatmul.mubr.msk.f32.vlgmr.msra.gmra.mrb[10].mxu1 %vm65_vm1, %v998_v7 }
  0x4a   :  { %1082 = vmatmul.mubr.msk.f32.vlgmr.msra.gmra.mrb[10].mxu0 %vm65_vm1, %v998_v7 }
 0x106   :  { %v217_v23 = vpop.f32.mrb[0].mxu1 }
 0x107   :  { %v1038_v26 = vpop.f32.mrb[1].mxu1 }
 0x109   :  { %v141_v22 = vpop.f32.mrb[0].mxu0 }
 0x10a   :  { %v218_v24 = vadd.f32 %v217_v23, %v141_v22  ;;  %v1033_v25 = vpop.f32.mrb[1].mxu0 }
 0x10b   :  { %v365_v28 = vpop.f32.mrb[2].mxu1 }
 0x10c   :  { %v1048_v31 = vpop.f32.mrb[3].mxu1 }
 0x10d   :  { %v291_v27 = vpop.f32.mrb[2].mxu0 }
 0x10e   :  { %v292_v29 = vadd.f32 %v291_v27, %v218_v24  ;;  %v1043_v30 = vpop.f32.mrb[3].mxu0 }
 0x10f   :  { %v511_v34 = vpop.f32.mrb[4].mxu1 }
 0x110   :  { %v366_v32 = vadd.f32 %v365_v28, %v292_v29  ;;  %v1058_v37 = vpop.f32.mrb[5].mxu1 }
 0x111   :  { %v439_v33 = vpop.f32.mrb[4].mxu0 }
 0x112   :  { %v440_v35 = vadd.f32 %v439_v33, %v366_v32  ;;  %v1053_v36 = vpop.f32.mrb[5].mxu0 }
 0x113   :  { %v667_v40 = vpop.f32.mrb[6].mxu1 }
 0x114   :  { %v512_v38 = vadd.f32 %v511_v34, %v440_v35  ;;  %v1068_v43 = vpop.f32.mrb[7].mxu1 }
 0x115   :  { %v591_v39 = vpop.f32.mrb[6].mxu0 }
 0x116   :  { %v668_v41 = vadd.f32 %v667_v40, %v591_v39  ;;  %v1063_v42 = vpop.f32.mrb[7].mxu0  ;;  %516 = vst [vmem:[#allocation7] sm:$0xff] %v512_v38 }
 0x117   :  { %v815_v45 = vpop.f32.mrb[8].mxu1 }
 0x119   :  { %v741_v44 = vpop.f32.mrb[8].mxu0 }
 0x11a   :  { %1150 = shalt.err (!%p1147_p6)
}
 0x11b   :  { %s1151_s13 = scalar_lea.hbm %s1311_s2, 128 }
 0x11c   :  { %p1152_p7 = scmp.ne.s32.totalorder %s1311_s2, %s1151_s13  ;;  %p1155_p8 = scmp.lt.u32.totalorder %s1151_s13, %s1311_s2 }
 0x11e   :  { %p1157_p9 = pnand %p1155_p8, %p1152_p7 }
 0x120   :  { %1160 = shalt.err (!%p1157_p9)
}
 0x121   :  { %976 = dma.vmem_to_hbm [thread:$0]  %s974_s9, 128, %s1311_s2, [#allocation4]   ;;  %v742_v46 = vadd.f32 %v741_v44, %v668_v41  ;;  %v1073_v47 = vpop.f32.mrb[9].mxu0  ;;  %v1078_v48 = vpop.f32.mrb[9].mxu1 }
 0x122   :  { %v889_v50 = vpop.f32.mrb[10].mxu0  ;;  %v961_v51 = vpop.f32.mrb[10].mxu1  ;;  %s1196_s20 = smov [#allocation8]  }
 0x123   :  { %v816_v49 = vadd.f32 %v815_v45, %v742_v46  ;;  %v1083_v53 = vpop.f32.mrb[11].mxu0  ;;  %v1088_v54 = vpop.f32.mrb[11].mxu1  ;;  %s983_s21 = sshll.u32 %s1196_s20, 4  ;;  %s984_s21 = int_to_ptr.vmem [resolvable:$true] %s983_s21 }
 0x124   :  { %s1161_s22 = scalar_lea.vmem %s984_s21, 128  ;;  %p1166_p11 = scmp.lt.s32.totalorder %s984_s21, %s984_s21 }
 0x125   :  { %v890_v52 = vadd.f32 %v889_v50, %v816_v49  ;;  %p1162_p10 = scmp.ne.s32.totalorder %s984_s21, %s1161_s22  ;;  %p1167_p12 = scmp.lt.s32.totalorder %s1161_s22, %s1161_s22 }
 0x127   :  { %v962_v55 = vadd.f32 %v961_v51, %v890_v52  ;;  %p1168_p13 = por %p1167_p12, %p1166_p11 }
 0x129   :  { %966 = vst [vmem:[#allocation8] sm:$0xff] %v962_v55  ;;  %p1169_p0 = pnand %p1168_p13, %p1162_p10 }
 0x12b   :  { %1172 = shalt.err (!%p1169_p0)
}
 0x12c   :  { %s1173_s24 = scalar_lea.hbm %s1312_s3, 128 }
 0x12d   :  { %p1174_p1 = scmp.ne.s32.totalorder %s1312_s3, %s1173_s24  ;;  %p1177_p2 = scmp.lt.u32.totalorder %s1173_s24, %s1312_s3 }
 0x12f   :  { %p1179_p3 = pnand %p1177_p2, %p1174_p1 }
 0x131   :  { %1182 = shalt.err (!%p1179_p3)
}
 0x132   :  { %986 = dma.vmem_to_hbm [thread:$0]  %s984_s21, 128, %s1312_s3, [#allocation9]  }
 0x133   :  { %1187 = dma.done.wait [#allocation4], 128  }
 0x134   :  { %1188 = vsyncadd [#allocation4], 4294967168 }
 0x135   :  { %1189 = dma.done.wait [#allocation9], 128  }
 0x136   :  { %1190 = vsyncadd [#allocation9], 4294967168 }
 0x137   :  { %993 = vsyncpa [#allocation3], 1 }
 0x138   :  { %994 = vsyncpa [#allocation6], 1 }
 0x139   :  { %995 = vsyncpa [#allocation4], 1 }
 0x13a   :  { %996 = vsyncpa [#allocation9], 1 }

</bundles_post_ra>
